<compile_context>
chip_gen: v6e
topology: v6e:2x2x1
jax: 0.10.0
libtpu: 0.0.40
codegen_flags: <defaults>
</compile_context>

<pallas_src>
import functools

import jax
import jax.numpy as jnp
from jax.experimental import pallas as pl
from jax.experimental.pallas import tpu as pltpu


_ROW_TILE_CAP = 512                 # multiple of 8
_VMEM_LIMIT = 48 * 1024 * 1024      # leave headroom under v7x's 64 MiB physical


def _row_tile(rows: int) -> int:
    """Largest row tile (cap 512) that still gives the 'parallel' grid axis
    >=2 (ideally ~4) steps, so both v7x TensorCores get work and DMA/compute
    overlap; multiple of 8 (or the full extent for tiny inputs)."""
    if rows <= 8:
        return rows
    target = max(8, -(-rows // 4))          # aim for ~4 grid steps
    tm = -(-target // 8) * 8                # round up to a sublane multiple
    return min(tm, _ROW_TILE_CAP, rows)


def _const_spec(shape):
    """BlockSpec for grid-invariant (weight/bias) operands: block index never
    changes, so single-buffer it instead of the default double buffering."""
    return pl.BlockSpec(shape, lambda i: (0, 0), pipeline_mode=pl.Buffered(1))


# ---------------------------------------------------------------------------
# Kernel 1: fused to_qk / to_v projection (both branches' rows in one call)
# ---------------------------------------------------------------------------
def _qkv_proj_kernel(x_ref, wqk_ref, bqk_ref, wv_ref, bv_ref, qk_ref, v_ref):
    x = x_ref[...]                                        # (tm, E)
    qk = jnp.dot(x, wqk_ref[...], preferred_element_type=jnp.float32) + bqk_ref[...]
    v = jnp.dot(x, wv_ref[...], preferred_element_type=jnp.float32) + bv_ref[...]
    qk_ref[...] = qk.astype(qk_ref.dtype)
    v_ref[...] = v.astype(v_ref.dtype)


def _qkv_proj(x2d, wqk, bqk, wv, bv):
    rows, e = x2d.shape
    inner = wqk.shape[1]
    tm = _row_tile(rows)
    itemsize = jnp.dtype(x2d.dtype).itemsize
    cost = pl.CostEstimate(
        flops=4 * rows * e * inner,
        transcendentals=0,
        bytes_accessed=(rows * e + 2 * e * inner + 2 * inner + 2 * rows * inner) * itemsize)
    return pl.pallas_call(
        _qkv_proj_kernel,
        out_shape=(jax.ShapeDtypeStruct((rows, inner), x2d.dtype),
                   jax.ShapeDtypeStruct((rows, inner), x2d.dtype)),
        grid=(pl.cdiv(rows, tm),),
        in_specs=[
            pl.BlockSpec((tm, e), lambda i: (i, 0)),
            _const_spec((e, inner)),
            _const_spec((1, inner)),
            _const_spec((e, inner)),
            _const_spec((1, inner)),
        ],
        out_specs=(pl.BlockSpec((tm, inner), lambda i: (i, 0)),
                   pl.BlockSpec((tm, inner), lambda i: (i, 0))),
        compiler_params=pltpu.CompilerParams(
            dimension_semantics=("parallel",),
            vmem_limit_bytes=_VMEM_LIMIT),
        cost_estimate=cost,
    )(x2d, wqk, bqk, wv, bv)


# ---------------------------------------------------------------------------
# Kernel 2: bidirectional cross-attention, one batch element per grid step,
# lane-dense (N, E) inputs/outputs, heads via static lane slices in VMEM.
# ---------------------------------------------------------------------------
def _cross_attn_kernel(qk0_ref, qk1_ref, v0_ref, v1_ref, m0_ref, m1_ref, *,
                       num_heads, scale):
    q0 = qk0_ref[0] * scale            # pre-scale q0 (cheaper than scaling sim)
    q1 = qk1_ref[0]
    v0 = v0_ref[0]
    v1 = v1_ref[0]
    e = q0.shape[-1]
    dh = e // num_heads

    def softmax(s, axis):
        m = jnp.max(s, axis=axis, keepdims=True)
        ex = jnp.exp(s - m)
        inv = pl.reciprocal(jnp.sum(ex, axis=axis, keepdims=True), approx=True)
        return ex * inv

    m0_parts, m1_parts = [], []
    for h in range(num_heads):                     # static unroll over heads
        sl = slice(h * dh, (h + 1) * dh)
        q0h, q1h = q0[:, sl], q1[:, sl]
        v0h, v1h = v0[:, sl], v1[:, sl]

        # sim = scale * q0h @ q1h^T  — computed once; both attention
        # directions are derived from it (sim10 == sim01^T never formed).
        sim = jax.lax.dot_general(q0h, q1h, (((1,), (1,)), ((), ())),
                                  preferred_element_type=jnp.float32)  # (N0, N1)
        a01 = softmax(sim, axis=-1)                # 0 attends to 1 (rows)
        a10 = softmax(sim, axis=0)                 # 1 attends to 0 (columns)

        m0_parts.append(jnp.dot(a01.astype(v1h.dtype), v1h,
                                preferred_element_type=jnp.float32))   # (N0, Dh)
        # m1 = a10^T @ v0h, via dimension numbers (no explicit transpose).
        m1_parts.append(jax.lax.dot_general(a10.astype(v0h.dtype), v0h,
                                            (((0,), (0,)), ((), ())),
                                            preferred_element_type=jnp.float32))  # (N1, Dh)

    m0_ref[0] = jnp.concatenate(m0_parts, axis=-1).astype(m0_ref.dtype)
    m1_ref[0] = jnp.concatenate(m1_parts, axis=-1).astype(m1_ref.dtype)


def _cross_attention(qk0, qk1, v0, v1, *, num_heads, scale):
    bsz, n0, e = qk0.shape
    n1 = qk1.shape[1]
    itemsize = jnp.dtype(qk0.dtype).itemsize
    kernel = functools.partial(_cross_attn_kernel, num_heads=num_heads, scale=scale)
    cost = pl.CostEstimate(
        flops=6 * bsz * n0 * n1 * e,
        transcendentals=2 * bsz * num_heads * n0 * n1,
        bytes_accessed=3 * bsz * (n0 + n1) * e * itemsize)
    spec0 = pl.BlockSpec((1, n0, e), lambda g: (g, 0, 0))
    spec1 = pl.BlockSpec((1, n1, e), lambda g: (g, 0, 0))
    return pl.pallas_call(
        kernel,
        out_shape=(jax.ShapeDtypeStruct((bsz, n0, e), v1.dtype),
                   jax.ShapeDtypeStruct((bsz, n1, e), v0.dtype)),
        grid=(bsz,),
        in_specs=[spec0, spec1, spec0, spec1],
        out_specs=(spec0, spec1),
        compiler_params=pltpu.CompilerParams(
            dimension_semantics=("parallel",),
            vmem_limit_bytes=_VMEM_LIMIT),
        cost_estimate=cost,
    )(qk0, qk1, v0, v1)


# ---------------------------------------------------------------------------
# Kernel 3: fused to_out projection + FFN (Linear -> LayerNorm -> GELU ->
# Linear) + residual.  cat([x, m], -1) is never materialized: W1 is consumed
# as two Ref slices so cat(x, m) @ W1 == x @ W1[:E] + m @ W1[E:].
# ---------------------------------------------------------------------------
def _out_ffn_kernel(x_ref, m_ref, wo_ref, bo_ref, w1_ref, b1_ref, g_ref,
                    beta_ref, w2_ref, b2_ref, o_ref, *, embed_dim, eps):
    x = x_ref[...]                                          # (tm, E)
    # to_out fused in (saves a full HBM write + read of m per branch).
    m = (jnp.dot(m_ref[...], wo_ref[...], preferred_element_type=jnp.float32)
         + bo_ref[...]).astype(x.dtype)

    h = (jnp.dot(x, w1_ref[pl.ds(0, embed_dim), :],
                 preferred_element_type=jnp.float32)
         + jnp.dot(m, w1_ref[pl.ds(embed_dim, embed_dim), :],
                   preferred_element_type=jnp.float32)
         + b1_ref[...])

    mu = jnp.mean(h, axis=-1, keepdims=True)
    var = jnp.mean(jnp.square(h - mu), axis=-1, keepdims=True)
    ln = (h - mu) * jax.lax.rsqrt(var + eps) * g_ref[...] + beta_ref[...]

    # TODO(synk): torch nn.GELU() default is the exact erf form; the tanh
    # approximation is used here (|diff| < ~3e-4) to stay on ops Mosaic lowers.
    c = 0.7978845608028654  # sqrt(2/pi)
    gelu = 0.5 * ln * (1.0 + jnp.tanh(c * (ln + 0.044715 * ln * ln * ln)))

    out = (jnp.dot(gelu.astype(x.dtype), w2_ref[...],
                   preferred_element_type=jnp.float32) + b2_ref[...])
    o_ref[...] = (x.astype(jnp.float32) + out).astype(o_ref.dtype)


def _out_ffn_residual(x2d, m2d, wo, bo, w1, b1, gamma, beta, w2, b2, *, eps=1e-5):
    rows, e = x2d.shape
    inner = m2d.shape[1]
    two_e = w1.shape[0]
    tm = _row_tile(rows)
    itemsize = jnp.dtype(x2d.dtype).itemsize
    kernel = functools.partial(_out_ffn_kernel, embed_dim=e, eps=eps)
    weight_elems = inner * e + two_e * two_e + two_e * e + 3 * two_e + 2 * e
    cost = pl.CostEstimate(
        flops=rows * (2 * inner * e + 2 * two_e * two_e + 2 * two_e * e),
        transcendentals=rows * (two_e + 1),
        bytes_accessed=(rows * (2 * e + inner) + weight_elems) * itemsize)
    return pl.pallas_call(
        kernel,
        out_shape=jax.ShapeDtypeStruct((rows, e), x2d.dtype),
        grid=(pl.cdiv(rows, tm),),
        in_specs=[pl.BlockSpec((tm, e), lambda i: (i, 0)),
                  pl.BlockSpec((tm, inner), lambda i: (i, 0)),
                  _const_spec((inner, e)),
                  _const_spec((1, e)),
                  _const_spec((two_e, two_e)),
                  _const_spec((1, two_e)),
                  _const_spec((1, two_e)),
                  _const_spec((1, two_e)),
                  _const_spec((two_e, e)),
                  _const_spec((1, e))],
        out_specs=pl.BlockSpec((tm, e), lambda i: (i, 0)),
        compiler_params=pltpu.CompilerParams(
            dimension_semantics=("parallel",),
            vmem_limit_bytes=_VMEM_LIMIT),
        cost_estimate=cost,
    )(x2d, m2d, wo, bo, w1, b1, gamma, beta, w2, b2)


# ---------------------------------------------------------------------------
# Full CrossBlock forward (mask=None path)
# ---------------------------------------------------------------------------
@functools.partial(jax.jit, static_argnames=("num_heads",))
def cross_block(x0, x1, params, *, num_heads):
    """CrossBlock.forward.  Weights are stored (in_features, out_features),
    i.e. torch `linear.weight.T`; biases as (1, out_features).
    TODO(synk): the optional attention mask path (mask is not None) is not
    implemented; this is the mask=None forward."""
    b, n0, e = x0.shape
    n1 = x1.shape[1]
    inner = params["to_qk_w"].shape[1]
    dh = inner // num_heads
    scale = dh ** -0.5

    r0 = b * n0
    # Both branches share all weights: run them through a single call each so
    # weights are DMA'd from HBM once and the grid has more steps to pipeline.
    x_cat = jnp.concatenate([x0.reshape(r0, e), x1.reshape(b * n1, e)], axis=0)

    qk_cat, v_cat = _qkv_proj(x_cat, params["to_qk_w"], params["to_qk_b"],
                              params["to_v_w"], params["to_v_b"])

    qk0 = qk_cat[:r0].reshape(b, n0, inner)
    qk1 = qk_cat[r0:].reshape(b, n1, inner)
    v0 = v_cat[:r0].reshape(b, n0, inner)
    v1 = v_cat[r0:].reshape(b, n1, inner)

    m0, m1 = _cross_attention(qk0, qk1, v0, v1, num_heads=num_heads, scale=scale)

    m_cat = jnp.concatenate([m0.reshape(r0, inner),
                             m1.reshape(b * n1, inner)], axis=0)

    y_cat = _out_ffn_residual(x_cat, m_cat,
                              params["to_out_w"], params["to_out_b"],
                              params["ffn_w1"], params["ffn_b1"],
                              params["ln_g"], params["ln_b"],
                              params["ffn_w2"], params["ffn_b2"])
    return y_cat[:r0].reshape(b, n0, e), y_cat[r0:].reshape(b, n1, e)


# ---------------------------------------------------------------------------
# Plain-JAX reference (mirrors the torch forward, tanh-GELU variant)
# ---------------------------------------------------------------------------
def _gelu_tanh(x):
    c = 0.7978845608028654
    return 0.5 * x * (1.0 + jnp.tanh(c * (x + 0.044715 * x ** 3)))


def cross_block_reference(x0, x1, p, num_heads):
    b, n0, e = x0.shape
    h = num_heads
    dh = e // h
    scale = dh ** -0.5

    qk0 = x0 @ p["to_qk_w"] + p["to_qk_b"]
    qk1 = x1 @ p["to_qk_w"] + p["to_qk_b"]
    v0 = x0 @ p["to_v_w"] + p["to_v_b"]
    v1 = x1 @ p["to_v_w"] + p["to_v_b"]

    def heads(t):
        return t.reshape(b, -1, h, dh).transpose(0, 2, 1, 3)

    qk0, qk1, v0, v1 = map(heads, (qk0, qk1, v0, v1))
    qk0 = qk0 * scale ** 0.5
    qk1 = qk1 * scale ** 0.5
    sim = jnp.einsum("bhid,bhjd->bhij", qk0, qk1)
    attn01 = jax.nn.softmax(sim, axis=-1)
    attn10 = jax.nn.softmax(jnp.swapaxes(sim, -2, -1), axis=-1)
    m0 = jnp.einsum("bhij,bhjd->bhid", attn01, v1)
    m1 = jnp.einsum("bhij,bhjd->bhid", attn10, v0)

    def merge(t):
        return t.transpose(0, 2, 1, 3).reshape(b, -1, h * dh)

    m0 = merge(m0) @ p["to_out_w"] + p["to_out_b"]
    m1 = merge(m1) @ p["to_out_w"] + p["to_out_b"]

    def ffn(x, m):
        cat = jnp.concatenate([x, m], axis=-1)
        hh = cat @ p["ffn_w1"] + p["ffn_b1"]
        mu = hh.mean(-1, keepdims=True)
        var = jnp.square(hh - mu).mean(-1, keepdims=True)
        ln = (hh - mu) / jnp.sqrt(var + 1e-5) * p["ln_g"] + p["ln_b"]
        return x + _gelu_tanh(ln) @ p["ffn_w2"] + p["ffn_b2"]

    return ffn(x0, m0), ffn(x1, m1)


if __name__ == "__main__":
    key = jax.random.PRNGKey(0)
    ks = jax.random.split(key, 14)

    B, N, E, H = 2, 8, 32, 2          # batch=2, seq=8, hidden=32, heads=2
    inner = E
    dtype = jnp.float32

    def init(k, shape, s):
        return jax.random.normal(k, shape, dtype) * s

    params = {
        "to_qk_w": init(ks[0], (E, inner), E ** -0.5),
        "to_qk_b": init(ks[1], (1, inner), 0.1),
        "to_v_w": init(ks[2], (E, inner), E ** -0.5),
        "to_v_b": init(ks[3], (1, inner), 0.1),
        "to_out_w": init(ks[4], (inner, E), inner ** -0.5),
        "to_out_b": init(ks[5], (1, E), 0.1),
        "ffn_w1": init(ks[6], (2 * E, 2 * E), (2 * E) ** -0.5),
        "ffn_b1": init(ks[7], (1, 2 * E), 0.1),
        "ln_g": 1.0 + 0.05 * jax.random.normal(ks[8], (1, 2 * E), dtype),
        "ln_b": init(ks[9], (1, 2 * E), 0.1),
        "ffn_w2": init(ks[10], (2 * E, E), (2 * E) ** -0.5),
        "ffn_b2": init(ks[11], (1, E), 0.1),
    }

    x0 = jax.random.normal(ks[12], (B, N, E), dtype)
    x1 = jax.random.normal(ks[13], (B, N, E), dtype)

    y0, y1 = cross_block(x0, x1, params, num_heads=H)
    jax.block_until_ready((y0, y1))

    r0, r1 = cross_block_reference(x0, x1, params, H)
    assert y0.shape == (B, N, E) and y1.shape == (B, N, E)
    # tolerance slightly widened for the EUP approximate reciprocal in softmax
    assert jnp.allclose(y0, r0, atol=5e-3, rtol=5e-3), "x0 branch mismatch"
    assert jnp.allclose(y1, r1, atol=5e-3, rtol=5e-3), "x1 branch mismatch"

    print("KERNEL_OK")
</pallas_src>

<mosaic_0001>
module attributes {stable_mosaic.version = 11 : i64} {
  func.func @_cross_attn_kernel(%arg0: i32, %arg1: memref<1x8x32xf32, #tpu.memory_space<vmem>>, %arg2: memref<1x8x32xf32, #tpu.memory_space<vmem>>, %arg3: memref<1x8x32xf32, #tpu.memory_space<vmem>>, %arg4: memref<1x8x32xf32, #tpu.memory_space<vmem>>, %arg5: memref<1x8x32xf32, #tpu.memory_space<vmem>>, %arg6: memref<1x8x32xf32, #tpu.memory_space<vmem>>) attributes {dimension_semantics = [#tpu.dimension_semantics<parallel>], iteration_bounds = array<i64: 2>, scalar_prefetch = 0 : i64, scratch_operands = 0 : i64, tpu.core_type = #tpu.core_type<tc>, window_params = [{transform_indices = @transform_0, window_bounds = array<i64: 1, 8, 32>}, {transform_indices = @transform_1, window_bounds = array<i64: 1, 8, 32>}, {transform_indices = @transform_2, window_bounds = array<i64: 1, 8, 32>}, {transform_indices = @transform_3, window_bounds = array<i64: 1, 8, 32>}, {transform_indices = @transform_4, window_bounds = array<i64: 1, 8, 32>}, {transform_indices = @transform_5, window_bounds = array<i64: 1, 8, 32>}]} {
    %c0 = arith.constant 0 : index
    %c0_0 = arith.constant 0 : index
    %c0_1 = arith.constant 0 : index
    %0 = vector.load %arg1[%c0, %c0_0, %c0_1] : memref<1x8x32xf32, #tpu.memory_space<vmem>>, vector<1x8x32xf32>
    %1 = vector.shape_cast %0 : vector<1x8x32xf32> to vector<8x32xf32>
    %cst = arith.constant 2.500000e-01 : f32
    %2 = vector.broadcast %cst : f32 to vector<8x32xf32>
    %3 = arith.mulf %1, %2 : vector<8x32xf32>
    %c0_2 = arith.constant 0 : index
    %c0_3 = arith.constant 0 : index
    %c0_4 = arith.constant 0 : index
    %4 = vector.load %arg2[%c0_2, %c0_3, %c0_4] : memref<1x8x32xf32, #tpu.memory_space<vmem>>, vector<1x8x32xf32>
    %5 = vector.shape_cast %4 : vector<1x8x32xf32> to vector<8x32xf32>
    %c0_5 = arith.constant 0 : index
    %c0_6 = arith.constant 0 : index
    %c0_7 = arith.constant 0 : index
    %6 = vector.load %arg3[%c0_5, %c0_6, %c0_7] : memref<1x8x32xf32, #tpu.memory_space<vmem>>, vector<1x8x32xf32>
    %7 = vector.shape_cast %6 : vector<1x8x32xf32> to vector<8x32xf32>
    %c0_8 = arith.constant 0 : index
    %c0_9 = arith.constant 0 : index
    %c0_10 = arith.constant 0 : index
    %8 = vector.load %arg4[%c0_8, %c0_9, %c0_10] : memref<1x8x32xf32, #tpu.memory_space<vmem>>, vector<1x8x32xf32>
    %9 = vector.shape_cast %8 : vector<1x8x32xf32> to vector<8x32xf32>
    %10 = vector.extract_strided_slice %3 {offsets = [0, 0], sizes = [8, 16], strides = [1, 1]} : vector<8x32xf32> to vector<8x16xf32>
    %11 = vector.extract_strided_slice %5 {offsets = [0, 0], sizes = [8, 16], strides = [1, 1]} : vector<8x32xf32> to vector<8x16xf32>
    %12 = vector.extract_strided_slice %7 {offsets = [0, 0], sizes = [8, 16], strides = [1, 1]} : vector<8x32xf32> to vector<8x16xf32>
    %13 = vector.extract_strided_slice %9 {offsets = [0, 0], sizes = [8, 16], strides = [1, 1]} : vector<8x32xf32> to vector<8x16xf32>
    %cst_11 = arith.constant dense<0.000000e+00> : vector<8x8xf32>
    %14 = tpu.matmul %10, %11, %cst_11 {dimension_numbers = #tpu.dot_dimension_numbers<[1], [1], [0], [0], [0, 0, 1, 0], [], []>} : vector<8x16xf32>, vector<8x16xf32>, vector<8x8xf32> -> vector<8x8xf32>
    %cst_12 = arith.constant dense<0xFF800000> : vector<8xf32>
    %15 = vector.multi_reduction <maximumf>, %14, %cst_12 [1] : vector<8x8xf32> to vector<8xf32>
    %16 = vector.shape_cast %15 : vector<8xf32> to vector<8x1xf32>
    %17 = vector.broadcast %16 : vector<8x1xf32> to vector<8x8xf32>
    %18 = arith.subf %14, %17 : vector<8x8xf32>
    %19 = math.exp %18 : vector<8x8xf32>
    %cst_13 = arith.constant dense<0.000000e+00> : vector<8xf32>
    %20 = vector.multi_reduction <add>, %19, %cst_13 [1] : vector<8x8xf32> to vector<8xf32>
    %21 = vector.shape_cast %20 : vector<8xf32> to vector<8x1xf32>
    %22 = tpu.reciprocal %21 {approx = true} : vector<8x1xf32> -> vector<8x1xf32>
    %23 = vector.broadcast %22 : vector<8x1xf32> to vector<8x8xf32>
    %24 = arith.mulf %19, %23 : vector<8x8xf32>
    %cst_14 = arith.constant dense<0xFF800000> : vector<8xf32>
    %25 = vector.multi_reduction <maximumf>, %14, %cst_14 [0] : vector<8x8xf32> to vector<8xf32>
    %26 = vector.shape_cast %25 : vector<8xf32> to vector<1x8xf32>
    %27 = vector.broadcast %26 : vector<1x8xf32> to vector<8x8xf32>
    %28 = arith.subf %14, %27 : vector<8x8xf32>
    %29 = math.exp %28 : vector<8x8xf32>
    %cst_15 = arith.constant dense<0.000000e+00> : vector<8xf32>
    %30 = vector.multi_reduction <add>, %29, %cst_15 [0] : vector<8x8xf32> to vector<8xf32>
    %31 = vector.shape_cast %30 : vector<8xf32> to vector<1x8xf32>
    %32 = tpu.reciprocal %31 {approx = true} : vector<1x8xf32> -> vector<1x8xf32>
    %33 = vector.broadcast %32 : vector<1x8xf32> to vector<8x8xf32>
    %34 = arith.mulf %29, %33 : vector<8x8xf32>
    %cst_16 = arith.constant dense<0.000000e+00> : vector<8x16xf32>
    %35 = tpu.matmul %24, %13, %cst_16 {dimension_numbers = #tpu.dot_dimension_numbers<[1], [0], [0], [1], [0, 0, 1, 1], [], []>} : vector<8x8xf32>, vector<8x16xf32>, vector<8x16xf32> -> vector<8x16xf32>
    %cst_17 = arith.constant dense<0.000000e+00> : vector<8x16xf32>
    %36 = tpu.matmul %34, %12, %cst_17 {dimension_numbers = #tpu.dot_dimension_numbers<[0], [0], [1], [1], [0, 1, 1, 1], [], []>} : vector<8x8xf32>, vector<8x16xf32>, vector<8x16xf32> -> vector<8x16xf32>
    %37 = vector.extract_strided_slice %3 {offsets = [0, 16], sizes = [8, 16], strides = [1, 1]} : vector<8x32xf32> to vector<8x16xf32>
    %38 = vector.extract_strided_slice %5 {offsets = [0, 16], sizes = [8, 16], strides = [1, 1]} : vector<8x32xf32> to vector<8x16xf32>
    %39 = vector.extract_strided_slice %7 {offsets = [0, 16], sizes = [8, 16], strides = [1, 1]} : vector<8x32xf32> to vector<8x16xf32>
    %40 = vector.extract_strided_slice %9 {offsets = [0, 16], sizes = [8, 16], strides = [1, 1]} : vector<8x32xf32> to vector<8x16xf32>
    %cst_18 = arith.constant dense<0.000000e+00> : vector<8x8xf32>
    %41 = tpu.matmul %37, %38, %cst_18 {dimension_numbers = #tpu.dot_dimension_numbers<[1], [1], [0], [0], [0, 0, 1, 0], [], []>} : vector<8x16xf32>, vector<8x16xf32>, vector<8x8xf32> -> vector<8x8xf32>
    %cst_19 = arith.constant dense<0xFF800000> : vector<8xf32>
    %42 = vector.multi_reduction <maximumf>, %41, %cst_19 [1] : vector<8x8xf32> to vector<8xf32>
    %43 = vector.shape_cast %42 : vector<8xf32> to vector<8x1xf32>
    %44 = vector.broadcast %43 : vector<8x1xf32> to vector<8x8xf32>
    %45 = arith.subf %41, %44 : vector<8x8xf32>
    %46 = math.exp %45 : vector<8x8xf32>
    %cst_20 = arith.constant dense<0.000000e+00> : vector<8xf32>
    %47 = vector.multi_reduction <add>, %46, %cst_20 [1] : vector<8x8xf32> to vector<8xf32>
    %48 = vector.shape_cast %47 : vector<8xf32> to vector<8x1xf32>
    %49 = tpu.reciprocal %48 {approx = true} : vector<8x1xf32> -> vector<8x1xf32>
    %50 = vector.broadcast %49 : vector<8x1xf32> to vector<8x8xf32>
    %51 = arith.mulf %46, %50 : vector<8x8xf32>
    %cst_21 = arith.constant dense<0xFF800000> : vector<8xf32>
    %52 = vector.multi_reduction <maximumf>, %41, %cst_21 [0] : vector<8x8xf32> to vector<8xf32>
    %53 = vector.shape_cast %52 : vector<8xf32> to vector<1x8xf32>
    %54 = vector.broadcast %53 : vector<1x8xf32> to vector<8x8xf32>
    %55 = arith.subf %41, %54 : vector<8x8xf32>
    %56 = math.exp %55 : vector<8x8xf32>
    %cst_22 = arith.constant dense<0.000000e+00> : vector<8xf32>
    %57 = vector.multi_reduction <add>, %56, %cst_22 [0] : vector<8x8xf32> to vector<8xf32>
    %58 = vector.shape_cast %57 : vector<8xf32> to vector<1x8xf32>
    %59 = tpu.reciprocal %58 {approx = true} : vector<1x8xf32> -> vector<1x8xf32>
    %60 = vector.broadcast %59 : vector<1x8xf32> to vector<8x8xf32>
    %61 = arith.mulf %56, %60 : vector<8x8xf32>
    %cst_23 = arith.constant dense<0.000000e+00> : vector<8x16xf32>
    %62 = tpu.matmul %51, %40, %cst_23 {dimension_numbers = #tpu.dot_dimension_numbers<[1], [0], [0], [1], [0, 0, 1, 1], [], []>} : vector<8x8xf32>, vector<8x16xf32>, vector<8x16xf32> -> vector<8x16xf32>
    %cst_24 = arith.constant dense<0.000000e+00> : vector<8x16xf32>
    %63 = tpu.matmul %61, %39, %cst_24 {dimension_numbers = #tpu.dot_dimension_numbers<[0], [0], [1], [1], [0, 1, 1, 1], [], []>} : vector<8x8xf32>, vector<8x16xf32>, vector<8x16xf32> -> vector<8x16xf32>
    %64 = tpu.concatenate %35, %62 in 1 : vector<8x16xf32>, vector<8x16xf32> -> vector<8x32xf32>
    %c0_25 = arith.constant 0 : index
    %c0_26 = arith.constant 0 : index
    %c0_27 = arith.constant 0 : index
    %65 = vector.load %arg5[%c0_25, %c0_26, %c0_27] : memref<1x8x32xf32, #tpu.memory_space<vmem>>, vector<1x8x32xf32>
    %66 = vector.shape_cast %65 : vector<1x8x32xf32> to vector<8x32xf32>
    %67 = vector.shape_cast %64 : vector<8x32xf32> to vector<1x8x32xf32>
    tpu.vector_store %arg5[%c0_25, %c0_26, %c0_27], %67 {strides = array<i32>} : memref<1x8x32xf32, #tpu.memory_space<vmem>>, vector<1x8x32xf32>,
    %68 = tpu.concatenate %36, %63 in 1 : vector<8x16xf32>, vector<8x16xf32> -> vector<8x32xf32>
    %c0_28 = arith.constant 0 : index
    %c0_29 = arith.constant 0 : index
    %c0_30 = arith.constant 0 : index
    %69 = vector.load %arg6[%c0_28, %c0_29, %c0_30] : memref<1x8x32xf32, #tpu.memory_space<vmem>>, vector<1x8x32xf32>
    %70 = vector.shape_cast %69 : vector<1x8x32xf32> to vector<8x32xf32>
    %71 = vector.shape_cast %68 : vector<8x32xf32> to vector<1x8x32xf32>
    tpu.vector_store %arg6[%c0_28, %c0_29, %c0_30], %71 {strides = array<i32>} : memref<1x8x32xf32, #tpu.memory_space<vmem>>, vector<1x8x32xf32>,
    return
  }
  func.func @transform_0(%arg0: i32) -> (i32, i32, i32) {
    %c0_i32 = arith.constant 0 : i32
    %c0_i32_0 = arith.constant 0 : i32
    %c0_i32_1 = arith.constant 0 : i32
    return %arg0, %c0_i32, %c0_i32_0 : i32, i32, i32
  }
  func.func @transform_1(%arg0: i32) -> (i32, i32, i32) {
    %c0_i32 = arith.constant 0 : i32
    %c0_i32_0 = arith.constant 0 : i32
    %c0_i32_1 = arith.constant 0 : i32
    return %arg0, %c0_i32, %c0_i32_0 : i32, i32, i32
  }
  func.func @transform_2(%arg0: i32) -> (i32, i32, i32) {
    %c0_i32 = arith.constant 0 : i32
    %c0_i32_0 = arith.constant 0 : i32
    %c0_i32_1 = arith.constant 0 : i32
    return %arg0, %c0_i32, %c0_i32_0 : i32, i32, i32
  }
  func.func @transform_3(%arg0: i32) -> (i32, i32, i32) {
    %c0_i32 = arith.constant 0 : i32
    %c0_i32_0 = arith.constant 0 : i32
    %c0_i32_1 = arith.constant 0 : i32
    return %arg0, %c0_i32, %c0_i32_0 : i32, i32, i32
  }
  func.func @transform_4(%arg0: i32) -> (i32, i32, i32) {
    %c0_i32 = arith.constant 0 : i32
    %c0_i32_0 = arith.constant 0 : i32
    %c0_i32_1 = arith.constant 0 : i32
    return %arg0, %c0_i32, %c0_i32_0 : i32, i32, i32
  }
  func.func @transform_5(%arg0: i32) -> (i32, i32, i32) {
    %c0_i32 = arith.constant 0 : i32
    %c0_i32_0 = arith.constant 0 : i32
    %c0_i32_1 = arith.constant 0 : i32
    return %arg0, %c0_i32, %c0_i32_0 : i32, i32, i32
  }
}

module attributes {stable_mosaic.version = 11 : i64} {
  func.func @_qkv_proj_kernel(%arg0: i32, %arg1: memref<8x32xf32, #tpu.memory_space<vmem>>, %arg2: memref<32x32xf32, #tpu.memory_space<vmem>>, %arg3: memref<1x32xf32, #tpu.memory_space<vmem>>, %arg4: memref<32x32xf32, #tpu.memory_space<vmem>>, %arg5: memref<1x32xf32, #tpu.memory_space<vmem>>, %arg6: memref<8x32xf32, #tpu.memory_space<vmem>>, %arg7: memref<8x32xf32, #tpu.memory_space<vmem>>) attributes {dimension_semantics = [#tpu.dimension_semantics<parallel>], iteration_bounds = array<i64: 4>, scalar_prefetch = 0 : i64, scratch_operands = 0 : i64, tpu.core_type = #tpu.core_type<tc>, window_params = [{transform_indices = @transform_0, window_bounds = array<i64: 8, 32>}, {pipeline_mode = #tpu.pipeline_mode<synchronous>, transform_indices = @transform_1, window_bounds = array<i64: 32, 32>}, {pipeline_mode = #tpu.pipeline_mode<synchronous>, transform_indices = @transform_2, window_bounds = array<i64: 1, 32>}, {pipeline_mode = #tpu.pipeline_mode<synchronous>, transform_indices = @transform_3, window_bounds = array<i64: 32, 32>}, {pipeline_mode = #tpu.pipeline_mode<synchronous>, transform_indices = @transform_4, window_bounds = array<i64: 1, 32>}, {transform_indices = @transform_5, window_bounds = array<i64: 8, 32>}, {transform_indices = @transform_6, window_bounds = array<i64: 8, 32>}]} {
    %c0 = arith.constant 0 : index
    %c0_0 = arith.constant 0 : index
    %0 = vector.load %arg1[%c0, %c0_0] : memref<8x32xf32, #tpu.memory_space<vmem>>, vector<8x32xf32>
    %c0_1 = arith.constant 0 : index
    %c0_2 = arith.constant 0 : index
    %1 = vector.load %arg2[%c0_1, %c0_2] : memref<32x32xf32, #tpu.memory_space<vmem>>, vector<32x32xf32>
    %cst = arith.constant dense<0.000000e+00> : vector<8x32xf32>
    %2 = tpu.matmul %0, %1, %cst {dimension_numbers = #tpu.dot_dimension_numbers<[1], [0], [0], [1], [0, 0, 1, 1], [], []>} : vector<8x32xf32>, vector<32x32xf32>, vector<8x32xf32> -> vector<8x32xf32>
    %c0_3 = arith.constant 0 : index
    %c0_4 = arith.constant 0 : index
    %3 = vector.load %arg3[%c0_3, %c0_4] : memref<1x32xf32, #tpu.memory_space<vmem>>, vector<1x32xf32>
    %4 = vector.broadcast %3 : vector<1x32xf32> to vector<8x32xf32>
    %5 = arith.addf %2, %4 : vector<8x32xf32>
    %c0_5 = arith.constant 0 : index
    %c0_6 = arith.constant 0 : index
    %6 = vector.load %arg4[%c0_5, %c0_6] : memref<32x32xf32, #tpu.memory_space<vmem>>, vector<32x32xf32>
    %cst_7 = arith.constant dense<0.000000e+00> : vector<8x32xf32>
    %7 = tpu.matmul %0, %6, %cst_7 {dimension_numbers = #tpu.dot_dimension_numbers<[1], [0], [0], [1], [0, 0, 1, 1], [], []>} : vector<8x32xf32>, vector<32x32xf32>, vector<8x32xf32> -> vector<8x32xf32>
    %c0_8 = arith.constant 0 : index
    %c0_9 = arith.constant 0 : index
    %8 = vector.load %arg5[%c0_8, %c0_9] : memref<1x32xf32, #tpu.memory_space<vmem>>, vector<1x32xf32>
    %9 = vector.broadcast %8 : vector<1x32xf32> to vector<8x32xf32>
    %10 = arith.addf %7, %9 : vector<8x32xf32>
    %c0_10 = arith.constant 0 : index
    %c0_11 = arith.constant 0 : index
    %11 = vector.load %arg6[%c0_10, %c0_11] : memref<8x32xf32, #tpu.memory_space<vmem>>, vector<8x32xf32>
    tpu.vector_store %arg6[%c0_10, %c0_11], %5 {strides = array<i32>} : memref<8x32xf32, #tpu.memory_space<vmem>>, vector<8x32xf32>,
    %c0_12 = arith.constant 0 : index
    %c0_13 = arith.constant 0 : index
    %12 = vector.load %arg7[%c0_12, %c0_13] : memref<8x32xf32, #tpu.memory_space<vmem>>, vector<8x32xf32>
    tpu.vector_store %arg7[%c0_12, %c0_13], %10 {strides = array<i32>} : memref<8x32xf32, #tpu.memory_space<vmem>>, vector<8x32xf32>,
    return
  }
  func.func @transform_0(%arg0: i32) -> (i32, i32) {
    %c0_i32 = arith.constant 0 : i32
    %c0_i32_0 = arith.constant 0 : i32
    return %arg0, %c0_i32 : i32, i32
  }
  func.func @transform_1(%arg0: i32) -> (i32, i32) {
    %c0_i32 = arith.constant 0 : i32
    %c0_i32_0 = arith.constant 0 : i32
    %c0_i32_1 = arith.constant 0 : i32
    return %c0_i32, %c0_i32_0 : i32, i32
  }
  func.func @transform_2(%arg0: i32) -> (i32, i32) {
    %c0_i32 = arith.constant 0 : i32
    %c0_i32_0 = arith.constant 0 : i32
    %c0_i32_1 = arith.constant 0 : i32
    return %c0_i32, %c0_i32_0 : i32, i32
  }
  func.func @transform_3(%arg0: i32) -> (i32, i32) {
    %c0_i32 = arith.constant 0 : i32
    %c0_i32_0 = arith.constant 0 : i32
    %c0_i32_1 = arith.constant 0 : i32
    return %c0_i32, %c0_i32_0 : i32, i32
  }
  func.func @transform_4(%arg0: i32) -> (i32, i32) {
    %c0_i32 = arith.constant 0 : i32
    %c0_i32_0 = arith.constant 0 : i32
    %c0_i32_1 = arith.constant 0 : i32
    return %c0_i32, %c0_i32_0 : i32, i32
  }
  func.func @transform_5(%arg0: i32) -> (i32, i32) {
    %c0_i32 = arith.constant 0 : i32
    %c0_i32_0 = arith.constant 0 : i32
    return %arg0, %c0_i32 : i32, i32
  }
  func.func @transform_6(%arg0: i32) -> (i32, i32) {
    %c0_i32 = arith.constant 0 : i32
    %c0_i32_0 = arith.constant 0 : i32
    return %arg0, %c0_i32 : i32, i32
  }
}

module attributes {stable_mosaic.version = 11 : i64} {
  func.func @_out_ffn_kernel(%arg0: i32, %arg1: memref<8x32xf32, #tpu.memory_space<vmem>>, %arg2: memref<8x32xf32, #tpu.memory_space<vmem>>, %arg3: memref<32x32xf32, #tpu.memory_space<vmem>>, %arg4: memref<1x32xf32, #tpu.memory_space<vmem>>, %arg5: memref<64x64xf32, #tpu.memory_space<vmem>>, %arg6: memref<1x64xf32, #tpu.memory_space<vmem>>, %arg7: memref<1x64xf32, #tpu.memory_space<vmem>>, %arg8: memref<1x64xf32, #tpu.memory_space<vmem>>, %arg9: memref<64x32xf32, #tpu.memory_space<vmem>>, %arg10: memref<1x32xf32, #tpu.memory_space<vmem>>, %arg11: memref<8x32xf32, #tpu.memory_space<vmem>>) attributes {dimension_semantics = [#tpu.dimension_semantics<parallel>], iteration_bounds = array<i64: 4>, scalar_prefetch = 0 : i64, scratch_operands = 0 : i64, tpu.core_type = #tpu.core_type<tc>, window_params = [{transform_indices = @transform_0, window_bounds = array<i64: 8, 32>}, {transform_indices = @transform_1, window_bounds = array<i64: 8, 32>}, {pipeline_mode = #tpu.pipeline_mode<synchronous>, transform_indices = @transform_2, window_bounds = array<i64: 32, 32>}, {pipeline_mode = #tpu.pipeline_mode<synchronous>, transform_indices = @transform_3, window_bounds = array<i64: 1, 32>}, {pipeline_mode = #tpu.pipeline_mode<synchronous>, transform_indices = @transform_4, window_bounds = array<i64: 64, 64>}, {pipeline_mode = #tpu.pipeline_mode<synchronous>, transform_indices = @transform_5, window_bounds = array<i64: 1, 64>}, {pipeline_mode = #tpu.pipeline_mode<synchronous>, transform_indices = @transform_6, window_bounds = array<i64: 1, 64>}, {pipeline_mode = #tpu.pipeline_mode<synchronous>, transform_indices = @transform_7, window_bounds = array<i64: 1, 64>}, {pipeline_mode = #tpu.pipeline_mode<synchronous>, transform_indices = @transform_8, window_bounds = array<i64: 64, 32>}, {pipeline_mode = #tpu.pipeline_mode<synchronous>, transform_indices = @transform_9, window_bounds = array<i64: 1, 32>}, {transform_indices = @transform_10, window_bounds = array<i64: 8, 32>}]} {
    %c0 = arith.constant 0 : index
    %c0_0 = arith.constant 0 : index
    %0 = vector.load %arg1[%c0, %c0_0] : memref<8x32xf32, #tpu.memory_space<vmem>>, vector<8x32xf32>
    %c0_1 = arith.constant 0 : index
    %c0_2 = arith.constant 0 : index
    %1 = vector.load %arg2[%c0_1, %c0_2] : memref<8x32xf32, #tpu.memory_space<vmem>>, vector<8x32xf32>
    %c0_3 = arith.constant 0 : index
    %c0_4 = arith.constant 0 : index
    %2 = vector.load %arg3[%c0_3, %c0_4] : memref<32x32xf32, #tpu.memory_space<vmem>>, vector<32x32xf32>
    %cst = arith.constant dense<0.000000e+00> : vector<8x32xf32>
    %3 = tpu.matmul %1, %2, %cst {dimension_numbers = #tpu.dot_dimension_numbers<[1], [0], [0], [1], [0, 0, 1, 1], [], []>} : vector<8x32xf32>, vector<32x32xf32>, vector<8x32xf32> -> vector<8x32xf32>
    %c0_5 = arith.constant 0 : index
    %c0_6 = arith.constant 0 : index
    %4 = vector.load %arg4[%c0_5, %c0_6] : memref<1x32xf32, #tpu.memory_space<vmem>>, vector<1x32xf32>
    %5 = vector.broadcast %4 : vector<1x32xf32> to vector<8x32xf32>
    %6 = arith.addf %3, %5 : vector<8x32xf32>
    %c0_7 = arith.constant 0 : index
    %c0_8 = arith.constant 0 : index
    %7 = vector.load %arg5[%c0_7, %c0_8] : memref<64x64xf32, #tpu.memory_space<vmem>>, vector<32x64xf32>
    %cst_9 = arith.constant dense<0.000000e+00> : vector<8x64xf32>
    %8 = tpu.matmul %0, %7, %cst_9 {dimension_numbers = #tpu.dot_dimension_numbers<[1], [0], [0], [1], [0, 0, 1, 1], [], []>} : vector<8x32xf32>, vector<32x64xf32>, vector<8x64xf32> -> vector<8x64xf32>
    %c32 = arith.constant 32 : index
    %c0_10 = arith.constant 0 : index
    %9 = vector.load %arg5[%c32, %c0_10] : memref<64x64xf32, #tpu.memory_space<vmem>>, vector<32x64xf32>
    %cst_11 = arith.constant dense<0.000000e+00> : vector<8x64xf32>
    %10 = tpu.matmul %6, %9, %cst_11 {dimension_numbers = #tpu.dot_dimension_numbers<[1], [0], [0], [1], [0, 0, 1, 1], [], []>} : vector<8x32xf32>, vector<32x64xf32>, vector<8x64xf32> -> vector<8x64xf32>
    %11 = arith.addf %8, %10 : vector<8x64xf32>
    %c0_12 = arith.constant 0 : index
    %c0_13 = arith.constant 0 : index
    %12 = vector.load %arg6[%c0_12, %c0_13] : memref<1x64xf32, #tpu.memory_space<vmem>>, vector<1x64xf32>
    %13 = vector.broadcast %12 : vector<1x64xf32> to vector<8x64xf32>
    %14 = arith.addf %11, %13 : vector<8x64xf32>
    %cst_14 = arith.constant dense<0.000000e+00> : vector<8xf32>
    %15 = vector.multi_reduction <add>, %14, %cst_14 [1] : vector<8x64xf32> to vector<8xf32>
    %16 = vector.shape_cast %15 : vector<8xf32> to vector<8x1xf32>
    %cst_15 = arith.constant 6.400000e+01 : f32
    %17 = vector.broadcast %cst_15 : f32 to vector<8x1xf32>
    %18 = arith.divf %16, %17 : vector<8x1xf32>
    %19 = vector.broadcast %18 : vector<8x1xf32> to vector<8x64xf32>
    %20 = arith.subf %14, %19 : vector<8x64xf32>
    %21 = arith.mulf %20, %20 : vector<8x64xf32>
    %cst_16 = arith.constant dense<0.000000e+00> : vector<8xf32>
    %22 = vector.multi_reduction <add>, %21, %cst_16 [1] : vector<8x64xf32> to vector<8xf32>
    %23 = vector.shape_cast %22 : vector<8xf32> to vector<8x1xf32>
    %cst_17 = arith.constant 6.400000e+01 : f32
    %24 = vector.broadcast %cst_17 : f32 to vector<8x1xf32>
    %25 = arith.divf %23, %24 : vector<8x1xf32>
    %26 = vector.broadcast %18 : vector<8x1xf32> to vector<8x64xf32>
    %27 = arith.subf %14, %26 : vector<8x64xf32>
    %cst_18 = arith.constant 9.99999974E-6 : f32
    %28 = vector.broadcast %cst_18 : f32 to vector<8x1xf32>
    %29 = arith.addf %25, %28 : vector<8x1xf32>
    %30 = math.rsqrt %29 : vector<8x1xf32>
    %31 = vector.broadcast %30 : vector<8x1xf32> to vector<8x64xf32>
    %32 = arith.mulf %27, %31 : vector<8x64xf32>
    %c0_19 = arith.constant 0 : index
    %c0_20 = arith.constant 0 : index
    %33 = vector.load %arg7[%c0_19, %c0_20] : memref<1x64xf32, #tpu.memory_space<vmem>>, vector<1x64xf32>
    %34 = vector.broadcast %33 : vector<1x64xf32> to vector<8x64xf32>
    %35 = arith.mulf %32, %34 : vector<8x64xf32>
    %c0_21 = arith.constant 0 : index
    %c0_22 = arith.constant 0 : index
    %36 = vector.load %arg8[%c0_21, %c0_22] : memref<1x64xf32, #tpu.memory_space<vmem>>, vector<1x64xf32>
    %37 = vector.broadcast %36 : vector<1x64xf32> to vector<8x64xf32>
    %38 = arith.addf %35, %37 : vector<8x64xf32>
    %cst_23 = arith.constant 5.000000e-01 : f32
    %39 = vector.broadcast %cst_23 : f32 to vector<8x64xf32>
    %40 = arith.mulf %39, %38 : vector<8x64xf32>
    %cst_24 = arith.constant 4.471500e-02 : f32
    %41 = vector.broadcast %cst_24 : f32 to vector<8x64xf32>
    %42 = arith.mulf %41, %38 : vector<8x64xf32>
    %43 = arith.mulf %42, %38 : vector<8x64xf32>
    %44 = arith.mulf %43, %38 : vector<8x64xf32>
    %45 = arith.addf %38, %44 : vector<8x64xf32>
    %cst_25 = arith.constant 0.797884583 : f32
    %46 = vector.broadcast %cst_25 : f32 to vector<8x64xf32>
    %47 = arith.mulf %46, %45 : vector<8x64xf32>
    %48 = math.tanh %47 : vector<8x64xf32>
    %cst_26 = arith.constant 1.000000e+00 : f32
    %49 = vector.broadcast %cst_26 : f32 to vector<8x64xf32>
    %50 = arith.addf %49, %48 : vector<8x64xf32>
    %51 = arith.mulf %40, %50 : vector<8x64xf32>
    %c0_27 = arith.constant 0 : index
    %c0_28 = arith.constant 0 : index
    %52 = vector.load %arg9[%c0_27, %c0_28] : memref<64x32xf32, #tpu.memory_space<vmem>>, vector<64x32xf32>
    %cst_29 = arith.constant dense<0.000000e+00> : vector<8x32xf32>
    %53 = tpu.matmul %51, %52, %cst_29 {dimension_numbers = #tpu.dot_dimension_numbers<[1], [0], [0], [1], [0, 0, 1, 1], [], []>} : vector<8x64xf32>, vector<64x32xf32>, vector<8x32xf32> -> vector<8x32xf32>
    %c0_30 = arith.constant 0 : index
    %c0_31 = arith.constant 0 : index
    %54 = vector.load %arg10[%c0_30, %c0_31] : memref<1x32xf32, #tpu.memory_space<vmem>>, vector<1x32xf32>
    %55 = vector.broadcast %54 : vector<1x32xf32> to vector<8x32xf32>
    %56 = arith.addf %53, %55 : vector<8x32xf32>
    %57 = arith.addf %0, %56 : vector<8x32xf32>
    %c0_32 = arith.constant 0 : index
    %c0_33 = arith.constant 0 : index
    %58 = vector.load %arg11[%c0_32, %c0_33] : memref<8x32xf32, #tpu.memory_space<vmem>>, vector<8x32xf32>
    tpu.vector_store %arg11[%c0_32, %c0_33], %57 {strides = array<i32>} : memref<8x32xf32, #tpu.memory_space<vmem>>, vector<8x32xf32>,
    return
  }
  func.func @transform_0(%arg0: i32) -> (i32, i32) {
    %c0_i32 = arith.constant 0 : i32
    %c0_i32_0 = arith.constant 0 : i32
    return %arg0, %c0_i32 : i32, i32
  }
  func.func @transform_1(%arg0: i32) -> (i32, i32) {
    %c0_i32 = arith.constant 0 : i32
    %c0_i32_0 = arith.constant 0 : i32
    return %arg0, %c0_i32 : i32, i32
  }
  func.func @transform_2(%arg0: i32) -> (i32, i32) {
    %c0_i32 = arith.constant 0 : i32
    %c0_i32_0 = arith.constant 0 : i32
    %c0_i32_1 = arith.constant 0 : i32
    return %c0_i32, %c0_i32_0 : i32, i32
  }
  func.func @transform_3(%arg0: i32) -> (i32, i32) {
    %c0_i32 = arith.constant 0 : i32
    %c0_i32_0 = arith.constant 0 : i32
    %c0_i32_1 = arith.constant 0 : i32
    return %c0_i32, %c0_i32_0 : i32, i32
  }
  func.func @transform_4(%arg0: i32) -> (i32, i32) {
    %c0_i32 = arith.constant 0 : i32
    %c0_i32_0 = arith.constant 0 : i32
    %c0_i32_1 = arith.constant 0 : i32
    return %c0_i32, %c0_i32_0 : i32, i32
  }
  func.func @transform_5(%arg0: i32) -> (i32, i32) {
    %c0_i32 = arith.constant 0 : i32
    %c0_i32_0 = arith.constant 0 : i32
    %c0_i32_1 = arith.constant 0 : i32
    return %c0_i32, %c0_i32_0 : i32, i32
  }
  func.func @transform_6(%arg0: i32) -> (i32, i32) {
    %c0_i32 = arith.constant 0 : i32
    %c0_i32_0 = arith.constant 0 : i32
    %c0_i32_1 = arith.constant 0 : i32
    return %c0_i32, %c0_i32_0 : i32, i32
  }
  func.func @transform_7(%arg0: i32) -> (i32, i32) {
    %c0_i32 = arith.constant 0 : i32
    %c0_i32_0 = arith.constant 0 : i32
    %c0_i32_1 = arith.constant 0 : i32
    return %c0_i32, %c0_i32_0 : i32, i32
  }
  func.func @transform_8(%arg0: i32) -> (i32, i32) {
    %c0_i32 = arith.constant 0 : i32
    %c0_i32_0 = arith.constant 0 : i32
    %c0_i32_1 = arith.constant 0 : i32
    return %c0_i32, %c0_i32_0 : i32, i32
  }
  func.func @transform_9(%arg0: i32) -> (i32, i32) {
    %c0_i32 = arith.constant 0 : i32
    %c0_i32_0 = arith.constant 0 : i32
    %c0_i32_1 = arith.constant 0 : i32
    return %c0_i32, %c0_i32_0 : i32, i32
  }
  func.func @transform_10(%arg0: i32) -> (i32, i32) {
    %c0_i32 = arith.constant 0 : i32
    %c0_i32_0 = arith.constant 0 : i32
    return %arg0, %c0_i32 : i32, i32
  }
}

</mosaic_0001>

<bundles_post_ra>
// kernel: cross_block.3
= control target key start
LH: loop header
LB: loop body
LE: loop exit
PB: predicated region body
PF: predicated region fallthrough
CT: control target
= control target key end

     0   :  { %s612_s21 = smov 0   ;;  %s671_s0 = inlined_call_operand.vmem [shape: f32[32,32], index: 0, kind: input, shape index: {}]   ;;  %s672_s1 = inlined_call_operand.vmem [shape: f32[32,32], index: 1, kind: input, shape index: {}]   ;;  %s673_s2 = inlined_call_operand.vmem [shape: f32[1,32], index: 2, kind: input, shape index: {}]   ;;  %s674_s3 = inlined_call_operand.vmem [shape: f32[32,32], index: 3, kind: input, shape index: {}]   ;;  %s675_s4 = inlined_call_operand.vmem [shape: f32[1,32], index: 4, kind: input, shape index: {}]   ;;  %s676_s5 = inlined_call_operand.vmem [shape: f32[32,32], index: 5, kind: output, shape index: {0}]   ;;  %s677_s6 = inlined_call_operand.vmem [shape: f32[32,32], index: 6, kind: output, shape index: {1}]  }
   0x1 LB: > { %s511_s22 = sadd.s32 4294967295, %s573_s21   ;;  %p515_p0 = scmp.ge.s32.totalorder %s573_s21, 1  ;;  %s573_s21 = sphi %s612_s21, %s17_s21  }
   0x2   : > { %p214_p1 = scmp.lt.s32.totalorder %s573_s21, 5 }
   0x4   : > { %p215_p2 = pnand %p515_p0, %p214_p1 }
   0x5   : > { %p246_p3 = scmp.lt.s32.totalorder (!%p215_p2), %s511_s22, 3 }
   0x6   : > { %218 = sbr.rel (%p215_p2) target bundleno = 217 (0xd9), region = 40 }
   0xb   : > { %v262_v0 = vld [vmem:[%s672_s1 + $0x18] sm:$0xff]  ;;  %v575_v2 = vmov 0.0   ;;  %v261_v3 = vld [vmem:[%s672_s1 + $0x10] sm:$0xff]  ;;  %s679_s22 = smov (!%p246_p3, %s511_s22), 3  ;;  %v260_v5 = vld [vmem:[%s672_s1 + $0x8] sm:$0xff]  ;;  %vm270_vm0 = vcmask 261120  }
   0xc   : > { %v347_v1 = vld [vmem:[%s674_s3 + $0x18] sm:$0xff]  ;;  %535 = vmatprep.subr.mxu0 %v575_v2  ;;  %546 = vmatprep.subr.mxu1 %v575_v2  ;;  %v346_v4 = vld [vmem:[%s674_s3 + $0x10] sm:$0xff]  ;;  %v345_v6 = vld [vmem:[%s674_s3 + $0x8] sm:$0xff]  ;;  %s638_s11 = sshll.u32 %s679_s22, 3  ;;  %vm576_vm1 = vmmov 0  }
   0xd   : > { %536 = vmatpush3.msra.mxu0 %v262_v0  ;;  %547 = vmatpush3.msra.mxu1 %v347_v1  ;;  %v259_v7 = vld [vmem:[%s672_s1] sm:$0xff]  ;;  %s249_s16 = scalar_lea.vmem %s671_s0, %s638_s11  ;;  %s253_s26 = scalar_lea.vmem %s676_s5, %s638_s11 }
   0xe   : > { %537 = vmatprep.subr.mxu0 %v575_v2  ;;  %548 = vmatprep.subr.mxu1 %v575_v2  ;;  %v344_v8 = vld [vmem:[%s674_s3] sm:$0xff]  ;;  %s257_s29 = scalar_lea.vmem %s677_s6, %s638_s11 }
   0xf   : > { %538 = vmatpush3.msra.mxu0 %v261_v3  ;;  %549 = vmatpush3.msra.mxu1 %v346_v4  ;;  %v258_v9 = vld [vmem:[%s249_s16] sm:$0xff] }
  0x10   : > { %539 = vmatprep.subr.mxu0 %v575_v2  ;;  %550 = vmatprep.subr.mxu1 %v575_v2  ;;  %v519_v10 = vld [vmem:[%s673_s2] ss:$0 sm:$0xff] }
  0x11   : > { %540 = vmatpush3.msra.mxu0 %v260_v5  ;;  %551 = vmatpush3.msra.mxu1 %v345_v6  ;;  %v521_v11 = vld [vmem:[%s675_s4] ss:$0 sm:$0xff] }
  0x12   : > { %541 = vmatprep.subr.mxu0 %v575_v2  ;;  %552 = vmatprep.subr.mxu1 %v575_v2 }
  0x13   : > { %542 = vmatpush3.msra.mxu0 %v259_v7  ;;  %543 = vmatprep.mubr.msk.f32.mxu0 %vm576_vm1, %v575_v2 }
  0x14   : > { %553 = vmatpush3.msra.mxu1 %v344_v8  ;;  %554 = vmatprep.mubr.msk.f32.mxu1 %vm576_vm1, %v575_v2 }
  0x15   : > { %544 = vmatmul.mubr.msk.f32.vlgmr.msra.gmra.mxu0 %vm270_vm0, %v258_v9  ;;  %555 = vmatmul.mubr.msk.f32.vlgmr.msra.gmra.mxu1 %vm270_vm0, %v258_v9 }
  0xd5   : > { %v340_v12 = vpop.f32.mrf.mxu0  ;;  %v421_v13 = vpop.f32.mrf.mxu1 }
  0xd6   : > { %v341_v14 = vadd.f32 %v519_v10, %v340_v12  ;;  %v422_v15 = vadd.f32 %v521_v11, %v421_v13 }
  0xd7   : > { %v545_v16 = vpop.f32.mrf.mxu0  ;;  %v556_v17 = vpop.f32.mrf.mxu1 }
  0xd8   : > { %425 = vst.msk [vmem:[%s253_s26] sm:$0xff] %vm270_vm0, %v341_v14  ;;  %426 = vst.msk [vmem:[%s257_s29] sm:$0xff] %vm270_vm0, %v422_v15 }
  0xd9 PF: > { %s17_s21 = sadd.s32 1, %s573_s21  }
  0xda   : > { %p14_p4 = scmp.ge.s32.totalorder %s17_s21, 6  }
  0xdc   :  { %16 = sbr.rel (!%p14_p4) target bundleno = 1 (0x1), region = 82 }

// kernel: cross_block.4
= control target key start
LH: loop header
LB: loop body
LE: loop exit
PB: predicated region body
PF: predicated region fallthrough
CT: control target
= control target key end

     0   :  { %s1131_s18 = smov 0   ;;  %s1206_s0 = inlined_call_operand.vmem [shape: f32[2,8,32], index: 0, kind: input, shape index: {}]   ;;  %s1207_s1 = inlined_call_operand.vmem [shape: f32[2,8,32], index: 1, kind: input, shape index: {}]   ;;  %s1208_s2 = inlined_call_operand.vmem [shape: f32[2,8,32], index: 2, kind: input, shape index: {}]   ;;  %s1209_s3 = inlined_call_operand.vmem [shape: f32[2,8,32], index: 3, kind: input, shape index: {}]   ;;  %s1210_s4 = inlined_call_operand.vmem [shape: f32[2,8,32], index: 4, kind: output, shape index: {0}]   ;;  %s1211_s5 = inlined_call_operand.vmem [shape: f32[2,8,32], index: 5, kind: output, shape index: {1}]  }
   0x1 LB: > { %s998_s19 = sadd.s32 4294967295, %s1095_s18   ;;  %p1002_p0 = scmp.ge.s32.totalorder %s1095_s18, 1  ;;  %s1095_s18 = sphi %s1131_s18, %s16_s18  }
   0x2   : > { %p216_p1 = scmp.lt.s32.totalorder %s1095_s18, 3 }
   0x4   : > { %p217_p2 = pnand %p1002_p0, %p216_p1 }
   0x5   : > { %p258_p3 = scmp.lt.s32.totalorder (!%p217_p2), %s998_s19, 1  ;;  %s1099_s27 = smov (!%p217_p2), 112  }
   0x6   : > { %220 = sbr.rel (%p217_p2) target bundleno = 975 (0x3cf), region = 36  ;;  %s1100_s9 = smov (!%p217_p2), 16  }
   0xb   : > { %v1097_v0 = vmov 0.0   ;;  %vm1098_vm0 = vmmov 0   ;;  %s1213_s19 = smov (!%p258_p3, %s998_s19), 1  ;;  %vm287_vm1 = vcmask 130048   ;;  %vm364_vm2 = vcmask 64512  }
   0xc   : > { %1031 = vmatprep.subr.mxu0 %v1097_v0  ;;  %1033 = vmatprep.mubr.msk.f32.mxu0 %vm1098_vm0, %v1097_v0  ;;  %s1145_s20 = sshll.u32 %s1213_s19, 3  ;;  %vm870_vm3 = vcmask 261120  }
   0xd   : > { %1036 = vmatprep.subr.mxu1 %v1097_v0  ;;  %1038 = vmatprep.mubr.msk.f32.mxu1 %vm1098_vm0, %v1097_v0  ;;  %s265_s23 = scalar_lea.vmem %s1207_s1, %s1145_s20  ;;  %s261_s26 = scalar_lea.vmem %s1206_s0, %s1145_s20 }
   0xe   : > { %v284_v1 = vld [vmem:[%s265_s23] sm:$0xff]  ;;  %s273_s30 = scalar_lea.vmem %s1209_s3, %s1145_s20  ;;  %s269_s8 = scalar_lea.vmem %s1208_s2, %s1145_s20 }
   0xf   : > { %v282_v2 = vld [vmem:[%s261_s26] sm:$0xff]  ;;  %574 = vrot.lane.b32.xlu0 %v284_v1, %s1099_s27  ;;  %1032 = vmatpush3.xpose.msk.msra.mxu0 %vm287_vm1, %v284_v1  ;;  %s281_s12 = scalar_lea.vmem %s1211_s5, %s1145_s20  ;;  %s277_s15 = scalar_lea.vmem %s1210_s4, %s1145_s20 }
  0x10   : > { %v283_v3 = vmul.f32 0.25, %v282_v2  ;;  %1046 = vmatprep.subr.mxu0 %v1097_v0  ;;  %v286_v9 = vld [vmem:[%s273_s30] sm:$0xff] }
  0x11   : > { %1037 = vmatpush3.msra.mxu1 %v286_v9  ;;  %v285_v20 = vld [vmem:[%s269_s8] sm:$0xff] }
  0x12   : > { %1034 = vmatmul.mubr.msk.f32.vlgmr.msra.gmra.mxu0 %vm287_vm1, %v283_v3  ;;  %1041 = vmatprep.subr.mxu1 %v1097_v0 }
  0x13   : > { %572 = vrot.lane.b32.xlu0 %v283_v3, %s1099_s27  ;;  %1048 = vmatprep.mubr.msk.f32.mxu0 %vm1098_vm0, %v1097_v0 }
  0x81   : > { %v575_v4 = vpop.permute.xlu0 %574 }
  0x82   : > { %1047 = vmatpush3.xpose.msk.msra.mxu0 %vm287_vm1, %v575_v4 }
  0x83   : > { %1056 = vmatprep.subr.mxu0 %v1097_v0 }
  0x85   : > { %v573_v5 = vpop.permute.xlu0 %572 }
  0x86   : > { %1049 = vmatmul.mubr.msk.f32.vlgmr.msra.gmra.mxu0 %vm287_vm1, %v573_v5 }
  0x87   : > { %1058 = vmatprep.mubr.msk.f32.mxu0 %vm1098_vm0, %v1097_v0 }
  0xd2   : > { %v360_v6 = vpop.f32.mrf.mxu0 }
  0xd3   : > { %v365_v7 = vsel %vm364_vm2, %v360_v6, -inf }
  0xd4   : > { %366 = vmax.xlane.f32.xlu1 %v365_v7  ;;  %v1035_v8 = vpop.f32.mrf.mxu0  ;;  %v376_v37 = vrot.slane %v365_v7, 4 }
  0xd6   : > { %v377_v38 = vmax.f32 %v365_v7, %v376_v37 }
  0xd8   : > { %v378_v39 = vrot.slane %v377_v38, 2 }
  0xda   : > { %v379_v40 = vmax.f32 %v377_v38, %v378_v39 }
  0xdc   : > { %v380_v41 = vrot.slane %v379_v40, 1 }
  0xde   : > { %v381_v42 = vmax.f32 %v379_v40, %v380_v41 }
  0xe0   : > { %v382_v45 = vsub.f32 %v360_v6, %v381_v42 }
  0xe2   : > { %v383_v48 = vmul.f32 1.442695, %v382_v45 }
 0x146   : > { %v646_v10 = vpop.f32.mrf.mxu0 }
 0x147   : > { %v650_v11 = vsel %vm364_vm2, %v646_v10, -inf }
 0x148   : > { %651 = vmax.xlane.f32.xlu1 %v650_v11  ;;  %v661_v12 = vrot.slane %v650_v11, 4  ;;  %v1050_v13 = vpop.f32.mrf.mxu0 }
 0x14a   : > { %v662_v14 = vmax.f32 %v650_v11, %v661_v12 }
 0x14c   : > { %v663_v15 = vrot.slane %v662_v14, 2 }
 0x14e   : > { %v664_v16 = vmax.f32 %v662_v14, %v663_v15 }
 0x150   : > { %v665_v17 = vrot.slane %v664_v16, 1 }
 0x152   : > { %v666_v18 = vmax.f32 %v664_v16, %v665_v17 }
 0x154   : > { %v667_v19 = vsub.f32 %v646_v10, %v666_v18 }
 0x156   : > { %v668_v21 = vmul.f32 1.442695, %v667_v19 }
 0x158   : > { %1073 = vpow2.f32 %v668_v21 }
 0x159   : > { %680 = vrot.lane.b32.xlu1 %v286_v9, %s1099_s27 }
 0x15d   : > { %v367_v22 = vpop.xlane.xlu1 %366  ;;  %789 = vrot.lane.b32.xlu1 %v285_v20, %s1099_s27 }
 0x15e   : > { %v368_v23 = vsub.f32 %v360_v6, %v367_v22 }
 0x160   : > { %v369_v24 = vmul.f32 1.442695, %v368_v23 }
 0x162   : > { %1075 = vpow2.f32 %v369_v24 }
 0x165   : > { %v1074_v25 = vpop.eup %1073 }
 0x166   : > { %v670_v28 = vsel %vm364_vm2, %v1074_v25, 0.0 }
 0x167   : > { %v671_v29 = vrot.slane %v670_v28, 4 }
 0x169   : > { %v672_v30 = vadd.f32 %v671_v29, %v670_v28 }
 0x16b   : > { %v673_v31 = vrot.slane %v672_v30, 2 }
 0x16d   : > { %v674_v32 = vadd.f32 %v673_v31, %v672_v30 }
 0x16f   : > { %v1076_v26 = vpop.eup %1075  ;;  %v675_v33 = vrot.slane %v674_v32, 1 }
 0x170   : > { %v371_v27 = vsel %vm364_vm2, %v1076_v26, 0.0 }
 0x171   : > { %372 = vadd.xlane.f32.xlu0 %v371_v27  ;;  %v676_v34 = vadd.f32 %v675_v33, %v674_v32 }
 0x173   : > { %1077 = vrcp.f32 %v676_v34 }
 0x180   : > { %v1078_v35 = vpop.eup %1077 }
 0x181   : > { %v678_v36 = vmul.f32 %v1078_v35, %v1074_v25 }
 0x19e   : > { %756 = vxpose.xlu0.b32.start.end [1/1] (short) (narrow) %v678_v36, 8 }
 0x1d1   : > { %v652_v43 = vpop.xlane.xlu1 %651 }
 0x1d2   : > { %v653_v44 = vsub.f32 %v646_v10, %v652_v43 }
 0x1d4   : > { %v654_v46 = vmul.f32 1.442695, %v653_v44 }
 0x1d5   : > { %v681_v47 = vpop.permute.xlu1 %680 }
 0x1d6   : > { %1079 = vpow2.f32 %v654_v46 }
 0x1d7   : > { %1081 = vpow2.f32 %v383_v48 }
 0x1d9   : > { %v790_v49 = vpop.permute.xlu1 %789 }
 0x1da   : > { %1057 = vmatpush3.msra.mxu0 %v790_v49 }
 0x1e3   : > { %v1080_v50 = vpop.eup %1079 }
 0x1e4   : > { %v656_v51 = vsel %vm364_vm2, %v1080_v50, 0.0  ;;  %v1082_v52 = vpop.eup %1081 }
 0x1e5   : > { %657 = vadd.xlane.f32.xlu1 %v656_v51  ;;  %v385_v53 = vsel %vm364_vm2, %v1082_v52, 0.0 }
 0x1e6   : > { %v386_v54 = vrot.slane %v385_v53, 4 }
 0x1e8   : > { %v387_v55 = vadd.f32 %v386_v54, %v385_v53 }
 0x1ea   : > { %v388_v56 = vrot.slane %v387_v55, 2 }
 0x1ec   : > { %v389_v58 = vadd.f32 %v388_v56, %v387_v55 }
 0x1ee   : > { %v390_v59 = vrot.slane %v389_v58, 1 }
 0x1f0   : > { %v391_v60 = vadd.f32 %v390_v59, %v389_v58 }
 0x1fa   : > { %v373_v57 = vpop.xlane.xlu0 %372 }
 0x1fb   : > { %1083 = vrcp.f32 %v373_v57 }
 0x1fc   : > { %1085 = vrcp.f32 %v391_v60 }
 0x208   : > { %v1084_v61 = vpop.eup %1083 }
 0x209   : > { %v375_v62 = vmul.f32 %v1084_v61, %v1076_v26  ;;  %v1086_v63 = vpop.eup %1085 }
 0x20a   : > { %v393_v1 = vmul.f32 %v1086_v63, %v1082_v52 }
 0x20b   : > { %1039 = vmatmul.mubr.msk.f32.vlgmr.msra.gmra.mxu1 %vm364_vm2, %v375_v62 }
 0x20c   : > { %1042 = vmatpush3.msra.mxu1 %v285_v20  ;;  %1043 = vmatprep.mubr.msk.f32.mxu1 %vm1098_vm0, %v1097_v0 }
 0x20d   : > { %1051 = vmatprep.subr.mxu1 %v1097_v0 }
 0x218   : > { %467 = vxpose.xlu1.b32.start.end [1/1] (short) (narrow) %v393_v1, 8 }
 0x21a   : > { %v772_v2 = vpop.trf.xlu0 }
 0x21b   : > { %1059 = vmatmul.mubr.msk.f32.vlgmr.msra.gmra.mxu0 %vm364_vm2, %v772_v2 }
 0x26e   : > { %v658_v3 = vpop.xlane.xlu1 %657 }
 0x26f   : > { %1087 = vrcp.f32 %v658_v3 }
 0x27c   : > { %v1088_v4 = vpop.eup %1087 }
 0x27d   : > { %v660_v6 = vmul.f32 %v1088_v4, %v1080_v50 }
 0x294   : > { %v483_v5 = vpop.trf.xlu1 }
 0x295   : > { %1044 = vmatmul.mubr.msk.f32.vlgmr.msra.gmra.mxu1 %vm364_vm2, %v483_v5 }
 0x296   : > { %1052 = vmatpush3.msra.mxu1 %v681_v47  ;;  %1053 = vmatprep.mubr.msk.f32.mxu1 %vm1098_vm0, %v1097_v0 }
 0x299   : > { %1054 = vmatmul.mubr.msk.f32.vlgmr.msra.gmra.mxu1 %vm364_vm2, %v660_v6 }
 0x2cb   : > { %v463_v7 = vpop.f32.mrf.mxu1 }
 0x2cd   : > { %v1040_v8 = vpop.f32.mrf.mxu1 }
 0x2db   : > { %v861_v9 = vpop.f32.mrf.mxu0 }
 0x2dc   : > { %873 = vrot.lane.b32.xlu0 %v861_v9, %s1100_s9 }
 0x2dd   : > { %v1060_v10 = vpop.f32.mrf.mxu0 }
 0x34e   : > { %v874_v11 = vpop.permute.xlu0 %873 }
 0x355   : > { %v568_v12 = vpop.f32.mrf.mxu1 }
 0x356   : > { %v876_v13 = vsel %vm287_vm1, %v568_v12, %v874_v11 }
 0x357   : > { %877 = vst.msk [vmem:[%s281_s12] sm:$0xff] %vm870_vm3, %v876_v13  ;;  %v1045_v0 = vpop.f32.mrf.mxu1 }
 0x359   : > { %v752_v14 = vpop.f32.mrf.mxu1 }
 0x35a   : > { %866 = vrot.lane.b32.xlu1 %v752_v14, %s1100_s9 }
 0x35b   : > { %v1055_v15 = vpop.f32.mrf.mxu1 }
 0x3cc   : > { %v867_v16 = vpop.permute.xlu1 %866 }
 0x3cd   : > { %v869_v17 = vsel %vm287_vm1, %v463_v7, %v867_v16 }
 0x3ce   : > { %871 = vst.msk [vmem:[%s277_s15] sm:$0xff] %vm870_vm3, %v869_v17 }
 0x3cf PF: > { %s16_s18 = sadd.s32 1, %s1095_s18  }
 0x3d0   : > { %p13_p4 = scmp.ge.s32.totalorder %s16_s18, 4  }
 0x3d2   :  { %15 = sbr.rel (!%p13_p4) target bundleno = 1 (0x1), region = 87 }

// kernel: cross_block.5
= control target key start
LH: loop header
LB: loop body
LE: loop exit
PB: predicated region body
PF: predicated region fallthrough
CT: control target
= control target key end

     0   :  { %s990_s13 = smov 0   ;;  %s1129_s0 = inlined_call_operand.vmem [shape: f32[32,32], index: 0, kind: input, shape index: {}]   ;;  %s1130_s1 = inlined_call_operand.vmem [shape: f32[32,32], index: 1, kind: input, shape index: {}]   ;;  %s1131_s2 = inlined_call_operand.vmem [shape: f32[32,32], index: 2, kind: input, shape index: {}]   ;;  %s1132_s3 = inlined_call_operand.vmem [shape: f32[1,32], index: 3, kind: input, shape index: {}]   ;;  %s1133_s4 = inlined_call_operand.vmem [shape: f32[64,64], index: 4, kind: input, shape index: {}]   ;;  %s1134_s5 = inlined_call_operand.vmem [shape: f32[1,64], index: 5, kind: input, shape index: {}]   ;;  %s1135_s6 = inlined_call_operand.vmem [shape: f32[1,64], index: 6, kind: input, shape index: {}]   ;;  %s1136_s7 = inlined_call_operand.vmem [shape: f32[1,64], index: 7, kind: input, shape index: {}]   ;;  %s1137_s8 = inlined_call_operand.vmem [shape: f32[64,32], index: 8, kind: input, shape index: {}]   ;;  %s1138_s9 = inlined_call_operand.vmem [shape: f32[1,32], index: 9, kind: input, shape index: {}]   ;;  %s1139_s10 = inlined_call_operand.vmem [shape: f32[32,32], index: 10, kind: output, shape index: {}]  }
   0x1 LB: > { %s816_s14 = sadd.s32 4294967295, %s931_s13   ;;  %p820_p0 = scmp.ge.s32.totalorder %s931_s13, 1  ;;  %s931_s13 = sphi %s990_s13, %s20_s13  }
   0x2   : > { %p320_p1 = scmp.lt.s32.totalorder %s931_s13, 5 }
   0x4   : > { %p321_p2 = pnand %p820_p0, %p320_p1 }
   0x5   : > { %p360_p3 = scmp.lt.s32.totalorder (!%p321_p2), %s816_s14, 3 }
   0x6   : > { %324 = sbr.rel (%p321_p2) target bundleno = 946 (0x3b2), region = 60 }
   0xb   : > { %v377_v0 = vld [vmem:[%s1131_s2 + $0x18] sm:$0xff]  ;;  %v933_v1 = vmov 0.0   ;;  %v376_v2 = vld [vmem:[%s1131_s2 + $0x10] sm:$0xff]  ;;  %vm934_vm0 = vmmov 0   ;;  %s1141_s14 = smov (!%p360_p3, %s816_s14), 3  ;;  %v375_v5 = vld [vmem:[%s1131_s2 + $0x8] sm:$0xff] }
   0xc   : > { %859 = vmatprep.subr.mxu0 %v933_v1  ;;  %867 = vmatprep.mubr.msk.f32.mxu0 %vm934_vm0, %v933_v1  ;;  %v466_v3 = vld [vmem:[%s1133_s4 + $0x38] sm:$0xff]  ;;  %v465_v4 = vld [vmem:[%s1133_s4 + $0x30] sm:$0xff]  ;;  %s1018_s25 = sshll.u32 %s1141_s14, 3  ;;  %v374_v6 = vld [vmem:[%s1131_s2] sm:$0xff]  ;;  %vm385_vm1 = vcmask 261120   ;;  %vm621_vm2 = vcmask 523264  }
   0xd   : > { %860 = vmatpush3.msra.mxu0 %v377_v0  ;;  %870 = vmatprep.subr.mxu1 %v933_v1  ;;  %s367_s30 = scalar_lea.vmem %s1130_s1, %s1018_s25  ;;  %v462_v8 = vld [vmem:[%s1133_s4 + $0x18] sm:$0xff]  ;;  %v461_v9 = vld [vmem:[%s1133_s4 + $0x10] sm:$0xff]  ;;  %v460_v10 = vld [vmem:[%s1133_s4 + $0x8] sm:$0xff]  ;;  %s363_s24 = scalar_lea.vmem %s1129_s0, %s1018_s25 }
   0xe   : > { %861 = vmatprep.subr.mxu0 %v933_v1  ;;  %871 = vmatpush3.msra.mxu1 %v466_v3  ;;  %v373_v7 = vld [vmem:[%s367_s30] sm:$0xff]  ;;  %v464_v11 = vld [vmem:[%s1133_s4 + $0x28] sm:$0xff]  ;;  %v668_v32 = vld [vmem:[%s1137_s8 + $0x38] sm:$0xff]  ;;  %s371_s19 = scalar_lea.vmem %s1139_s10, %s1018_s25 }
   0xf   : > { %862 = vmatpush3.msra.mxu0 %v376_v2  ;;  %872 = vmatprep.subr.mxu1 %v933_v1  ;;  %v459_v12 = vld [vmem:[%s1133_s4] sm:$0xff]  ;;  %v667_v33 = vld [vmem:[%s1137_s8 + $0x30] sm:$0xff]  ;;  %v666_v34 = vld [vmem:[%s1137_s8 + $0x28] sm:$0xff] }
  0x10   : > { %863 = vmatprep.subr.mxu0 %v933_v1  ;;  %873 = vmatpush3.msra.mxu1 %v465_v4  ;;  %v1059_v13 = vld [vmem:[%s363_s24] sm:$0xff]  ;;  %v664_v36 = vld [vmem:[%s1137_s8 + $0x18] sm:$0xff]  ;;  %v663_v37 = vld [vmem:[%s1137_s8 + $0x10] sm:$0xff] }
  0x11   : > { %864 = vmatpush3.msra.mxu0 %v375_v5  ;;  %874 = vmatprep.subr.mxu1 %v933_v1  ;;  %v463_v14 = vld [vmem:[%s1133_s4 + $0x20] sm:$0xff]  ;;  %v662_v38 = vld [vmem:[%s1137_s8 + $0x8] sm:$0xff] }
  0x12   : > { %865 = vmatprep.subr.mxu0 %v933_v1  ;;  %878 = vmatprep.mubr.msk.f32.mxu1 %vm934_vm0, %v933_v1  ;;  %v824_v15 = vld [vmem:[%s1132_s3] ss:$0 sm:$0xff] }
  0x13   : > { %866 = vmatpush3.msra.mxu0 %v374_v6  ;;  %875 = vmatpush3.msra.mxu1 %v464_v11  ;;  %v828_v22 = vld [vmem:[%s1134_s5] ss:$0 sm:$0xff] }
  0x14   : > { %868 = vmatmul.mubr.msk.f32.vlgmr.msra.gmra.mxu0 %vm385_vm1, %v373_v7  ;;  %881 = vmatprep.subr.mxu0 %v933_v1  ;;  %v665_v35 = vld [vmem:[%s1137_s8 + $0x20] sm:$0xff] }
  0x15   : > { %882 = vmatpush3.msra.mxu0 %v462_v8  ;;  %889 = vmatprep.mubr.msk.f32.mxu0 %vm934_vm0, %v933_v1  ;;  %v661_v39 = vld [vmem:[%s1137_s8] sm:$0xff] }
  0x16   : > { %883 = vmatprep.subr.mxu0 %v933_v1  ;;  %876 = vmatprep.subr.mxu1 %v933_v1  ;;  %v829_v44 = vld [vmem:[%s1135_s6] ss:$0 sm:$0xff] }
  0x17   : > { %884 = vmatpush3.msra.mxu0 %v461_v9  ;;  %877 = vmatpush3.msra.mxu1 %v463_v14  ;;  %v830_v46 = vld [vmem:[%s1136_s7] ss:$0 sm:$0xff] }
  0x18   : > { %885 = vmatprep.subr.mxu0 %v933_v1  ;;  %892 = vmatprep.subr.mxu1 %v933_v1  ;;  %v831_v58 = vld [vmem:[%s1138_s9] ss:$0 sm:$0xff] }
  0x19   : > { %886 = vmatpush3.msra.mxu0 %v460_v10 }
  0x1a   : > { %887 = vmatprep.subr.mxu0 %v933_v1 }
  0x1b   : > { %888 = vmatpush3.msra.mxu0 %v459_v12 }
  0x1c   : > { %890 = vmatmul.mubr.msk.f32.vlgmr.msra.gmra.mxu0 %vm385_vm1, %v1059_v13 }
  0xd4   : > { %v455_v16 = vpop.f32.mrf.mxu0 }
  0xd5   : > { %v456_v17 = vadd.f32 %v824_v15, %v455_v16 }
  0xd6   : > { %v869_v18 = vpop.f32.mrf.mxu0 }
  0xd7   : > { %879 = vmatmul.mubr.msk.f32.vlgmr.msra.gmra.mxu1 %vm385_vm1, %v456_v17 }
  0xd8   : > { %908 = vmatprep.mubr.msk.f32.mxu1 %vm934_vm0, %v933_v1  ;;  %893 = vmatpush3.msra.mxu1 %v668_v32 }
  0xd9   : > { %894 = vmatprep.subr.mxu1 %v933_v1 }
  0xda   : > { %895 = vmatpush3.msra.mxu1 %v667_v33 }
  0xdb   : > { %896 = vmatprep.subr.mxu1 %v933_v1 }
  0xdc   : > { %v609_v19 = vpop.f32.mrf.mxu0  ;;  %897 = vmatpush3.msra.mxu1 %v666_v34 }
  0xdd   : > { %898 = vmatprep.subr.mxu1 %v933_v1 }
  0xde   : > { %v891_v20 = vpop.f32.mrf.mxu0  ;;  %899 = vmatpush3.msra.mxu1 %v665_v35 }
  0xdf   : > { %900 = vmatprep.subr.mxu1 %v933_v1 }
  0xe0   : > { %901 = vmatpush3.msra.mxu1 %v664_v36 }
  0xe1   : > { %902 = vmatprep.subr.mxu1 %v933_v1 }
  0xe2   : > { %903 = vmatpush3.msra.mxu1 %v663_v37 }
  0xe3   : > { %904 = vmatprep.subr.mxu1 %v933_v1 }
  0xe4   : > { %905 = vmatpush3.msra.mxu1 %v662_v38 }
  0xe5   : > { %906 = vmatprep.subr.mxu1 %v933_v1 }
  0xe6   : > { %907 = vmatpush3.msra.mxu1 %v661_v39 }
 0x197   : > { %v536_v21 = vpop.f32.mrf.mxu1 }
 0x198   : > { %v610_v23 = vadd.f32 %v609_v19, %v536_v21 }
 0x199   : > { %v880_v24 = vpop.f32.mrf.mxu1 }
 0x19a   : > { %v620_v25 = vadd.f32 %v828_v22, %v610_v23 }
 0x19c   : > { %v622_v26 = vsel %vm621_vm2, %v620_v25, 0.0 }
 0x19d   : > { %623 = vadd.xlane.f32.xlu0 %v622_v26 }
 0x226   : > { %v624_v27 = vpop.xlane.xlu0 %623 }
 0x227   : > { %v626_v28 = vmul.f32 0.015625, %v624_v27 }
 0x229   : > { %v627_v29 = vsub.f32 %v620_v25, %v626_v28 }
 0x22b   : > { %v628_v30 = vmul.f32 %v627_v29, %v627_v29 }
 0x22d   : > { %v629_v31 = vsel %vm621_vm2, %v628_v30, 0.0 }
 0x22e   : > { %630 = vadd.xlane.f32.xlu0 %v629_v31 }
 0x2b7   : > { %v631_v40 = vpop.xlane.xlu0 %630 }
 0x2b8   : > { %v632_v41 = vmul.f32 0.015625, %v631_v40 }
 0x2ba   : > { %v633_v42 = vadd.f32 1e-05, %v632_v41 }
 0x2bc   : > { %921 = vrsqrt.f32 %v633_v42 }
 0x2c9   : > { %v922_v43 = vpop.eup %921 }
 0x2ca   : > { %v635_v45 = vmul.f32 %v922_v43, %v627_v29 }
 0x2cc   : > { %v643_v47 = vmul.f32 %v829_v44, %v635_v45 }
 0x2ce   : > { %v651_v48 = vadd.f32 %v830_v46, %v643_v47 }
 0x2d0   : > { %v653_v49 = vmul.f32 0.044715, %v651_v48  ;;  %v652_v55 = vmul.f32 0.5, %v651_v48 }
 0x2d2   : > { %v654_v50 = vmul.f32 %v653_v49, %v651_v48 }
 0x2d4   : > { %v655_v51 = vmul.f32 %v654_v50, %v651_v48 }
 0x2d6   : > { %v656_v52 = vadd.f32 %v655_v51, %v651_v48 }
 0x2d8   : > { %v657_v53 = vmul.f32 0.7978846, %v656_v52 }
 0x2da   : > { %923 = vtanh.f32 %v657_v53 }
 0x2e7   : > { %v924_v54 = vpop.eup %923 }
 0x2e8   : > { %v659_v56 = vadd.f32 1.0, %v924_v54 }
 0x2ea   : > { %v660_v57 = vmul.f32 %v659_v56, %v652_v55 }
 0x2ec   : > { %909 = vmatmul.mubr.msk.f32.vlgmr.msra.gmra.mxu1 %vm621_vm2, %v660_v57 }
 0x3ac   : > { %v745_v59 = vpop.f32.mrf.mxu1 }
 0x3ad   : > { %v746_v60 = vadd.f32 %v831_v58, %v745_v59 }
 0x3ae   : > { %v910_v61 = vpop.f32.mrf.mxu1 }
 0x3af   : > { %v749_v62 = vadd.f32 %v746_v60, %v1059_v13 }
 0x3b1   : > { %750 = vst.msk [vmem:[%s371_s19] sm:$0xff] %vm385_vm1, %v749_v62 }
 0x3b2 PF: > { %s20_s13 = sadd.s32 1, %s931_s13  }
 0x3b3   : > { %p17_p4 = scmp.ge.s32.totalorder %s20_s13, 6  }
 0x3b5   :  { %19 = sbr.rel (!%p17_p4) target bundleno = 1 (0x1), region = 93 }

</bundles_post_ra>
